<compile_context>
chip_gen: v5e
topology: v5e:2x2
jax: 0.10.0
libtpu: 0.0.40
codegen_flags: <defaults>
</compile_context>

<pallas_src>
import functools

import jax
import jax.numpy as jnp
from jax.experimental import pallas as pl
from jax.experimental.pallas import tpu as pltpu

NEG_SLOPE = 0.1


def _leaky_relu(x, slope=NEG_SLOPE):
    return jnp.where(x >= 0, x, slope * x)


def _round_up(a, m):
    return (a + m - 1) // m * m


def _block_diag(w, p):
    """Block-diagonal matrix with p copies of w on the diagonal: (p*in, p*out)."""
    if p == 1:
        return w
    return jnp.kron(jnp.eye(p, dtype=w.dtype), w)


def moveable_encoder_kernel(x_ref, w1s_ref, b1s_ref, w2_ref, b2_ref,
                            w3_ref, b3_ref, o_ref, *, ph):
    x = x_ref[...]                                            # (tile, P*F), stream dtype

    # Fused first layer: x @ [W1 | Ws] in one MXU pass, slice at a 128-lane boundary.
    t = jnp.dot(x, w1s_ref[...], preferred_element_type=jnp.float32) + b1s_ref[...]
    h1 = _leaky_relu(t[:, :ph])                               # mlp1[0] + LeakyReLU(0.1)
    skip = t[:, ph:]                                          # mlp_skip(x)

    # mlp1[2] Linear(H,H) + outer LeakyReLU(0.1)  (f32 accumulation throughout)
    net = _leaky_relu(
        jnp.dot(h1, w2_ref[...].astype(jnp.float32),
                preferred_element_type=jnp.float32) + b2_ref[...])

    # mlp2(net) + skip, final LeakyReLU(0.1)
    out = skip + jnp.dot(net, w3_ref[...].astype(jnp.float32),
                         preferred_element_type=jnp.float32) + b3_ref[...]
    o_ref[...] = _leaky_relu(out).astype(o_ref.dtype)


def pack_params(params, *, stream_dtype=jnp.bfloat16):
    """One-time packing of the (in, out)-layout weights for the Pallas kernel.

    Hoisted out of the per-call wrapper (review item): call once per parameter set.
    Weights are stored in `stream_dtype`, biases in f32 (added to the f32 accumulator).
    The dict mixes device arrays with static Python ints (P/F/H); if you jit a caller,
    close over the packed params rather than passing them as traced arguments.
    """
    F, H = params["w1"].shape
    P = 128 // H if (H <= 128 and 128 % H == 0) else 1
    w1s = jnp.concatenate([_block_diag(params["w1"], P),
                           _block_diag(params["ws"], P)], axis=1).astype(stream_dtype)
    b1s = jnp.concatenate([jnp.tile(params["b1"], (1, P)),
                           jnp.tile(params["bs"], (1, P))], axis=1).astype(jnp.float32)
    return {
        "w1s": w1s, "b1s": b1s,                                       # (PF, 2*PH), (1, 2*PH)
        "w2": _block_diag(params["w2"], P).astype(stream_dtype),      # (PH, PH)
        "b2": jnp.tile(params["b2"], (1, P)).astype(jnp.float32),     # (1, PH)
        "w3": _block_diag(params["w3"], P).astype(stream_dtype),      # (PH, PH)  (mlp2)
        "b3": jnp.tile(params["b3"], (1, P)).astype(jnp.float32),     # (1, PH)
        "P": P, "F": F, "H": H, "stream_dtype": stream_dtype,
    }


def moveable_encoder(x, packed, *, block_rows=8192):
    """x: (N, 8). Returns (N, H) in packed['stream_dtype'] (bf16 by default, f32 accum)."""
    N, F = x.shape
    P, H = packed["P"], packed["H"]
    assert F == packed["F"], "feature size mismatch with packed params"
    dt = packed["stream_dtype"]
    PF, PH = P * F, P * H
    SUB = 16                                   # row granularity: bf16 (16,128) packing, ok for f32

    # pack P consecutive boxes per kernel row so every tile is 128 lanes wide
    xp = x.astype(dt)
    pad = (-N) % P
    if pad:
        xp = jnp.pad(xp, ((0, pad), (0, 0)))
    Np = (N + pad) // P
    xp = xp.reshape(Np, PF)                    # free row-major reshape

    # Tile selection (review): large tiles (~block_rows boxes per step) to amortize the
    # per-step pipeline overhead, and an EVEN number of grid steps so v7x's two
    # TensorCores split the "parallel" axis evenly.
    if Np <= 2 * SUB:
        tile_p = Np                            # tiny input: single full-extent block
    else:
        target = max(block_rows // P, SUB)
        steps = 2 * pl.cdiv(Np, 2 * target)    # even step count
        tile_p = _round_up(pl.cdiv(Np, steps), SUB)
    grid = (pl.cdiv(Np, tile_p),)

    elt = jnp.dtype(dt).itemsize
    w_bytes = sum(int(packed[k].size) * packed[k].dtype.itemsize
                  for k in ("w1s", "b1s", "w2", "b2", "w3", "b3"))
    flops = 2 * N * (2 * F * H + 2 * H * H)    # logical flops (block-diag inflation ignored)
    bytes_accessed = int(N * (F + H) * elt + w_bytes)

    # VMEM budget: double-buffered in/out tiles + weights + generous room for the
    # f32 intermediates of one tile; well under v5e/v6e/v7x ceilings at default sizes.
    vmem_limit = int(min(2 * tile_p * (PF + PH) * elt + 2 * w_bytes
                         + 8 * tile_p * PH * 4 + (16 << 20), 56 << 20))

    kernel = functools.partial(moveable_encoder_kernel, ph=PH)
    full = lambda shape: pl.BlockSpec(shape, lambda i: (0,) * len(shape))

    out_p = pl.pallas_call(
        kernel,
        out_shape=jax.ShapeDtypeStruct((Np, PH), dt),
        grid_spec=pltpu.PrefetchScalarGridSpec(
            num_scalar_prefetch=0,
            grid=grid,
            in_specs=[
                pl.BlockSpec((tile_p, PF), lambda i: (i, 0)),   # packed x
                full((PF, 2 * PH)), full((1, 2 * PH)),          # [W1|Ws], [b1|bs]
                full((PH, PH)), full((1, PH)),                  # W2, b2
                full((PH, PH)), full((1, PH)),                  # W3, b3  (mlp2)
            ],
            out_specs=pl.BlockSpec((tile_p, PH), lambda i: (i, 0)),
        ),
        compiler_params=pltpu.CompilerParams(
            dimension_semantics=("parallel",),
            vmem_limit_bytes=vmem_limit),
        cost_estimate=pl.CostEstimate(
            flops=flops, transcendentals=0, bytes_accessed=bytes_accessed),
    )(xp, packed["w1s"], packed["b1s"], packed["w2"], packed["b2"],
      packed["w3"], packed["b3"])

    out = out_p.reshape(Np * P, H)             # free reshape back to (N_pad, H)
    return out[:N] if pad else out


def init_params(key, feature=8, hidden=32):
    ks = jax.random.split(key, 8)

    def lin(kw, kb, fin, fout):
        bound = 1.0 / (fin ** 0.5)
        w = jax.random.uniform(kw, (fin, fout), jnp.float32, -bound, bound)
        b = jax.random.uniform(kb, (1, fout), jnp.float32, -bound, bound)
        return w, b

    w1, b1 = lin(ks[0], ks[1], feature, hidden)
    w2, b2 = lin(ks[2], ks[3], hidden, hidden)
    ws, bs = lin(ks[4], ks[5], feature, hidden)
    w3, b3 = lin(ks[6], ks[7], hidden, hidden)
    return {"w1": w1, "b1": b1, "w2": w2, "b2": b2,
            "ws": ws, "bs": bs, "w3": w3, "b3": b3}


def reference(x, p):
    h1 = _leaky_relu(x @ p["w1"] + p["b1"])
    net = _leaky_relu(h1 @ p["w2"] + p["b2"])
    return _leaky_relu((x @ p["ws"] + p["bs"]) + (net @ p["w3"] + p["b3"]))


if __name__ == "__main__":
    key = jax.random.PRNGKey(0)
    k_x, k_p, k_x2, k_x3 = jax.random.split(key, 4)
    FEAT, HID = 8, 32
    params = init_params(k_p, FEAT, HID)

    packed_f32 = pack_params(params, stream_dtype=jnp.float32)    # exact-parity path
    packed_bf16 = pack_params(params, stream_dtype=jnp.bfloat16)  # fast streaming path (default)

    # small shape consistent with the module (8 boxes, 8 features, hidden 32): single block
    x_small = jax.random.normal(k_x, (8, FEAT), jnp.float32)
    out_small = jax.block_until_ready(moveable_encoder(x_small, packed_f32))
    assert out_small.shape == (8, HID)
    assert jnp.allclose(out_small, reference(x_small, params), atol=1e-5, rtol=1e-5), \
        "small-N mismatch vs JAX reference"

    # padding (N % 4 != 0) + two balanced grid steps, exact f32 parity
    x_mid = jax.random.normal(k_x2, (3001, FEAT), jnp.float32)
    out_mid = jax.block_until_ready(moveable_encoder(x_mid, packed_f32))
    assert out_mid.shape == (3001, HID)
    assert jnp.allclose(out_mid, reference(x_mid, params), atol=1e-4, rtol=1e-4), \
        "mid-N mismatch vs JAX reference"

    # larger N: four even grid steps (v7x-balanced), bf16 streaming with f32 accumulation
    x_big = jax.random.normal(k_x3, (20000, FEAT), jnp.float32)
    out_big = jax.block_until_ready(moveable_encoder(x_big, packed_bf16))
    assert out_big.shape == (20000, HID)
    assert out_big.dtype == jnp.bfloat16
    assert jnp.allclose(out_big.astype(jnp.float32), reference(x_big, params),
                        atol=6e-2, rtol=6e-2), "bf16 path mismatch vs f32 reference"

    print("KERNEL_OK")
</pallas_src>

<mosaic_0001>
module attributes {stable_mosaic.version = 11 : i64} {
  func.func @moveable_encoder_kernel(%arg0: i32, %arg1: memref<2x32xf32, #tpu.memory_space<vmem>>, %arg2: memref<32x256xf32, #tpu.memory_space<vmem>>, %arg3: memref<1x256xf32, #tpu.memory_space<vmem>>, %arg4: memref<128x128xf32, #tpu.memory_space<vmem>>, %arg5: memref<1x128xf32, #tpu.memory_space<vmem>>, %arg6: memref<128x128xf32, #tpu.memory_space<vmem>>, %arg7: memref<1x128xf32, #tpu.memory_space<vmem>>, %arg8: memref<2x128xf32, #tpu.memory_space<vmem>>) attributes {dimension_semantics = [#tpu.dimension_semantics<parallel>], iteration_bounds = array<i64: 1>, scalar_prefetch = 0 : i64, scratch_operands = 0 : i64, tpu.core_type = #tpu.core_type<tc>, window_params = [{transform_indices = @transform_0, window_bounds = array<i64: 2, 32>}, {pipeline_mode = #tpu.pipeline_mode<synchronous>, transform_indices = @transform_1, window_bounds = array<i64: 32, 256>}, {pipeline_mode = #tpu.pipeline_mode<synchronous>, transform_indices = @transform_2, window_bounds = array<i64: 1, 256>}, {pipeline_mode = #tpu.pipeline_mode<synchronous>, transform_indices = @transform_3, window_bounds = array<i64: 128, 128>}, {pipeline_mode = #tpu.pipeline_mode<synchronous>, transform_indices = @transform_4, window_bounds = array<i64: 1, 128>}, {pipeline_mode = #tpu.pipeline_mode<synchronous>, transform_indices = @transform_5, window_bounds = array<i64: 128, 128>}, {pipeline_mode = #tpu.pipeline_mode<synchronous>, transform_indices = @transform_6, window_bounds = array<i64: 1, 128>}, {transform_indices = @transform_7, window_bounds = array<i64: 2, 128>}]} {
    %c0 = arith.constant 0 : index
    %c0_0 = arith.constant 0 : index
    %0 = vector.load %arg1[%c0, %c0_0] : memref<2x32xf32, #tpu.memory_space<vmem>>, vector<2x32xf32>
    %c0_1 = arith.constant 0 : index
    %c0_2 = arith.constant 0 : index
    %1 = vector.load %arg2[%c0_1, %c0_2] : memref<32x256xf32, #tpu.memory_space<vmem>>, vector<32x256xf32>
    %cst = arith.constant dense<0.000000e+00> : vector<2x256xf32>
    %2 = tpu.matmul %0, %1, %cst {dimension_numbers = #tpu.dot_dimension_numbers<[1], [0], [0], [1], [0, 0, 1, 1], [], []>} : vector<2x32xf32>, vector<32x256xf32>, vector<2x256xf32> -> vector<2x256xf32>
    %c0_3 = arith.constant 0 : index
    %c0_4 = arith.constant 0 : index
    %3 = vector.load %arg3[%c0_3, %c0_4] : memref<1x256xf32, #tpu.memory_space<vmem>>, vector<1x256xf32>
    %4 = vector.broadcast %3 : vector<1x256xf32> to vector<2x256xf32>
    %5 = arith.addf %2, %4 : vector<2x256xf32>
    %6 = vector.extract_strided_slice %5 {offsets = [0, 0], sizes = [2, 128], strides = [1, 1]} : vector<2x256xf32> to vector<2x128xf32>
    %cst_5 = arith.constant 0.000000e+00 : f32
    %7 = vector.broadcast %cst_5 : f32 to vector<2x128xf32>
    %8 = arith.cmpf oge, %6, %7 : vector<2x128xf32>
    %cst_6 = arith.constant 1.000000e-01 : f32
    %9 = vector.broadcast %cst_6 : f32 to vector<2x128xf32>
    %10 = arith.mulf %9, %6 : vector<2x128xf32>
    %11 = arith.select %8, %6, %10 : vector<2x128xi1>, vector<2x128xf32>
    %12 = vector.extract_strided_slice %5 {offsets = [0, 128], sizes = [2, 128], strides = [1, 1]} : vector<2x256xf32> to vector<2x128xf32>
    %c0_7 = arith.constant 0 : index
    %c0_8 = arith.constant 0 : index
    %13 = vector.load %arg4[%c0_7, %c0_8] : memref<128x128xf32, #tpu.memory_space<vmem>>, vector<128x128xf32>
    %cst_9 = arith.constant dense<0.000000e+00> : vector<2x128xf32>
    %14 = tpu.matmul %11, %13, %cst_9 {dimension_numbers = #tpu.dot_dimension_numbers<[1], [0], [0], [1], [0, 0, 1, 1], [], []>} : vector<2x128xf32>, vector<128x128xf32>, vector<2x128xf32> -> vector<2x128xf32>
    %c0_10 = arith.constant 0 : index
    %c0_11 = arith.constant 0 : index
    %15 = vector.load %arg5[%c0_10, %c0_11] : memref<1x128xf32, #tpu.memory_space<vmem>>, vector<1x128xf32>
    %16 = vector.broadcast %15 : vector<1x128xf32> to vector<2x128xf32>
    %17 = arith.addf %14, %16 : vector<2x128xf32>
    %cst_12 = arith.constant 0.000000e+00 : f32
    %18 = vector.broadcast %cst_12 : f32 to vector<2x128xf32>
    %19 = arith.cmpf oge, %17, %18 : vector<2x128xf32>
    %cst_13 = arith.constant 1.000000e-01 : f32
    %20 = vector.broadcast %cst_13 : f32 to vector<2x128xf32>
    %21 = arith.mulf %20, %17 : vector<2x128xf32>
    %22 = arith.select %19, %17, %21 : vector<2x128xi1>, vector<2x128xf32>
    %c0_14 = arith.constant 0 : index
    %c0_15 = arith.constant 0 : index
    %23 = vector.load %arg6[%c0_14, %c0_15] : memref<128x128xf32, #tpu.memory_space<vmem>>, vector<128x128xf32>
    %cst_16 = arith.constant dense<0.000000e+00> : vector<2x128xf32>
    %24 = tpu.matmul %22, %23, %cst_16 {dimension_numbers = #tpu.dot_dimension_numbers<[1], [0], [0], [1], [0, 0, 1, 1], [], []>} : vector<2x128xf32>, vector<128x128xf32>, vector<2x128xf32> -> vector<2x128xf32>
    %25 = arith.addf %12, %24 : vector<2x128xf32>
    %c0_17 = arith.constant 0 : index
    %c0_18 = arith.constant 0 : index
    %26 = vector.load %arg7[%c0_17, %c0_18] : memref<1x128xf32, #tpu.memory_space<vmem>>, vector<1x128xf32>
    %27 = vector.broadcast %26 : vector<1x128xf32> to vector<2x128xf32>
    %28 = arith.addf %25, %27 : vector<2x128xf32>
    %cst_19 = arith.constant 0.000000e+00 : f32
    %29 = vector.broadcast %cst_19 : f32 to vector<2x128xf32>
    %30 = arith.cmpf oge, %28, %29 : vector<2x128xf32>
    %cst_20 = arith.constant 1.000000e-01 : f32
    %31 = vector.broadcast %cst_20 : f32 to vector<2x128xf32>
    %32 = arith.mulf %31, %28 : vector<2x128xf32>
    %33 = arith.select %30, %28, %32 : vector<2x128xi1>, vector<2x128xf32>
    %c0_21 = arith.constant 0 : index
    %c0_22 = arith.constant 0 : index
    %34 = vector.load %arg8[%c0_21, %c0_22] : memref<2x128xf32, #tpu.memory_space<vmem>>, vector<2x128xf32>
    tpu.vector_store %arg8[%c0_21, %c0_22], %33 {strides = array<i32>} : memref<2x128xf32, #tpu.memory_space<vmem>>, vector<2x128xf32>,
    return
  }
  func.func @transform_0(%arg0: i32) -> (i32, i32) {
    %c0_i32 = arith.constant 0 : i32
    %c0_i32_0 = arith.constant 0 : i32
    return %arg0, %c0_i32 : i32, i32
  }
  func.func @transform_1(%arg0: i32) -> (i32, i32) {
    %c0_i32 = arith.constant 0 : i32
    %c0_i32_0 = arith.constant 0 : i32
    %c0_i32_1 = arith.constant 0 : i32
    return %c0_i32, %c0_i32_0 : i32, i32
  }
  func.func @transform_2(%arg0: i32) -> (i32, i32) {
    %c0_i32 = arith.constant 0 : i32
    %c0_i32_0 = arith.constant 0 : i32
    %c0_i32_1 = arith.constant 0 : i32
    return %c0_i32, %c0_i32_0 : i32, i32
  }
  func.func @transform_3(%arg0: i32) -> (i32, i32) {
    %c0_i32 = arith.constant 0 : i32
    %c0_i32_0 = arith.constant 0 : i32
    %c0_i32_1 = arith.constant 0 : i32
    return %c0_i32, %c0_i32_0 : i32, i32
  }
  func.func @transform_4(%arg0: i32) -> (i32, i32) {
    %c0_i32 = arith.constant 0 : i32
    %c0_i32_0 = arith.constant 0 : i32
    %c0_i32_1 = arith.constant 0 : i32
    return %c0_i32, %c0_i32_0 : i32, i32
  }
  func.func @transform_5(%arg0: i32) -> (i32, i32) {
    %c0_i32 = arith.constant 0 : i32
    %c0_i32_0 = arith.constant 0 : i32
    %c0_i32_1 = arith.constant 0 : i32
    return %c0_i32, %c0_i32_0 : i32, i32
  }
  func.func @transform_6(%arg0: i32) -> (i32, i32) {
    %c0_i32 = arith.constant 0 : i32
    %c0_i32_0 = arith.constant 0 : i32
    %c0_i32_1 = arith.constant 0 : i32
    return %c0_i32, %c0_i32_0 : i32, i32
  }
  func.func @transform_7(%arg0: i32) -> (i32, i32) {
    %c0_i32 = arith.constant 0 : i32
    %c0_i32_0 = arith.constant 0 : i32
    return %arg0, %c0_i32 : i32, i32
  }
}

</mosaic_0001>

<bundles_post_ra>
// kernel: tpu_custom_call.1
= control target key start
LH: loop header
LB: loop body
LE: loop exit
PB: predicated region body
PF: predicated region fallthrough
CT: control target
= control target key end

     0   :  { %12 = vsyncpa [#allocation3], 0  ;;  %s517_s0 = inlined_call_operand.hbm [shape: f32[2,32], index: 0, kind: input, shape index: {}]   ;;  %s518_s1 = inlined_call_operand.hbm [shape: f32[32,256], index: 1, kind: input, shape index: {}]   ;;  %s519_s2 = inlined_call_operand.hbm [shape: f32[1,256], index: 2, kind: input, shape index: {}]   ;;  %s520_s3 = inlined_call_operand.hbm [shape: f32[128,128], index: 3, kind: input, shape index: {}]   ;;  %s521_s4 = inlined_call_operand.vmem [shape: f32[1,128], index: 4, kind: input, shape index: {}]   ;;  %s522_s5 = inlined_call_operand.hbm [shape: f32[128,128], index: 5, kind: input, shape index: {}]   ;;  %s523_s6 = inlined_call_operand.vmem [shape: f32[1,128], index: 6, kind: input, shape index: {}]   ;;  %s524_s7 = inlined_call_operand.hbm [shape: f32[2,128], index: 7, kind: output, shape index: {}]  }
   0x1   :  { %13 = vsyncpa [#allocation6], 0 }
   0x2   :  { %14 = vsyncpa [#allocation9], 0  ;;  %s31_s26 = sshll.u32 %s518_s1, 4  ;;  %s32_s26 = int_to_ptr.hbm [resolvable:$true] %s31_s26 }
   0x3   :  { %15 = vsyncpa [#allocation4], 0  ;;  %s437_s27 = smov [#allocation5]   ;;  %s55_s8 = sshll.u32 %s520_s3, 4  ;;  %s56_s8 = int_to_ptr.hbm [resolvable:$true] %s55_s8 }
   0x4   :  { %s33_s28 = sshll.u32 %s437_s27, 4  ;;  %s438_s9 = smov 256   ;;  %s34_s28 = int_to_ptr.vmem [resolvable:$true] %s33_s28 }
   0x5   :  { %s439_s10 = smov 16   ;;  %s440_s11 = smov [#allocation8]  }
   0x6   :  { %39 = dma.hbm_to_vmem [thread:$0]  %s32_s26, 1024, %s34_s28, [#allocation6], %s438_s9, %s438_s9, %s439_s10  }
   0x7   :  { %s57_s12 = sshll.u32 %s440_s11, 4  ;;  %s441_s13 = smov 128   ;;  %s58_s12 = int_to_ptr.vmem [resolvable:$true] %s57_s12 }
   0x8   :  { %s442_s14 = smov 8   ;;  %s21_s16 = sshll.u32 %s517_s0, 4  ;;  %s22_s16 = int_to_ptr.hbm [resolvable:$true] %s21_s16 }
   0x9   :  { %63 = dma.hbm_to_vmem [thread:$0]  %s56_s8, 2048, %s58_s12, [#allocation9], %s441_s13, %s441_s13, %s442_s14  }
   0xa   :  { %s443_s17 = smov [#allocation2]   ;;  %s45_s20 = sshll.u32 %s519_s2, 4  ;;  %s46_s20 = int_to_ptr.hbm [resolvable:$true] %s45_s20 }
   0xb   :  { %s23_s18 = sshll.u32 %s443_s17, 4  ;;  %s444_s21 = smov [#allocation7]   ;;  %s24_s18 = int_to_ptr.vmem [resolvable:$true] %s23_s18 }
   0xc   :  { %26 = dma.hbm_to_vmem [thread:$0]  %s22_s16, 32, %s24_s18, [#allocation3]  }
   0xd   :  { %s47_s22 = sshll.u32 %s444_s21, 4  ;;  %s70_s25 = sshll.u32 %s522_s5, 4  ;;  %s48_s22 = int_to_ptr.vmem [resolvable:$true] %s47_s22  ;;  %s71_s25 = int_to_ptr.hbm [resolvable:$true] %s70_s25 }
   0xe   :  { %50 = dma.hbm_to_vmem [thread:$0]  %s46_s20, 32, %s48_s22, [#allocation6]  }
   0xf   :  { %s445_s0 = smov [#allocation10]  }
  0x10   :  { %s72_s26 = sshll.u32 %s445_s0, 4  ;;  %s73_s26 = int_to_ptr.vmem [resolvable:$true] %s72_s26 }
  0x11   :  { %78 = dma.hbm_to_vmem [thread:$0]  %s71_s25, 2048, %s73_s26, [#allocation9], %s441_s13, %s441_s13, %s442_s14  }
  0x12   :  { %429 = dma.done.wait [#allocation3], 32  }
  0x13   :  { %430 = vsyncadd [#allocation3], 4294967264 }
  0x14   :  { %431 = dma.done.wait [#allocation6], 1056  }
  0x15   :  { %432 = vsyncadd [#allocation6], 4294966240 }
  0x16   :  { %433 = dma.done.wait [#allocation9], 4096  }
  0x17   :  { %434 = vsyncadd [#allocation9], 4294963200  ;;  %v108_v0 = vld [vmem:[#allocation5 + $0x30] sm:$0xff]  ;;  %v106_v1 = vld [vmem:[#allocation5 + $0x20] sm:$0xff]  ;;  %vm116_vm0 = vcmask 261120   ;;  %s446_s29 = smov [#allocation11]  }
  0x18   :  { %132 = vmatpush.msra.mxu0 %v108_v0  ;;  %v178_v2 = vld [vmem:[#allocation8 + $0x78] sm:$0xff]  ;;  %v104_v3 = vld [vmem:[#allocation5 + $0x10] sm:$0xff]  ;;  %v175_v8 = vld [vmem:[#allocation8 + $0x60] sm:$0xff]  ;;  %s257_s30 = sshll.u32 %s446_s29, 4  ;;  %s259_s9 = sshll.u32 %s524_s7, 4  ;;  %s258_s30 = int_to_ptr.vmem [resolvable:$true] %s257_s30  ;;  %s260_s9 = int_to_ptr.hbm [resolvable:$true] %s259_s9 }
  0x19   :  { %183 = vmatpush.msra.mxu2 %v178_v2  ;;  %v177_v4 = vld [vmem:[#allocation8 + $0x70] sm:$0xff]  ;;  %v176_v5 = vld [vmem:[#allocation8 + $0x68] sm:$0xff]  ;;  %v102_v6 = vld [vmem:[#allocation5] sm:$0xff] }
  0x1a   :  { %133 = vmatpush.msra.mxu0 %v106_v1  ;;  %v502_v7 = vld [vmem:[#allocation2] sm:$0x3]  ;;  %v173_v10 = vld [vmem:[#allocation8 + $0x50] sm:$0xff]  ;;  %v172_v11 = vld [vmem:[#allocation8 + $0x48] sm:$0xff] }
  0x1b   :  { %184 = vmatpush.msra.mxu2 %v177_v4  ;;  %v174_v9 = vld [vmem:[#allocation8 + $0x58] sm:$0xff]  ;;  %v171_v12 = vld [vmem:[#allocation8 + $0x40] sm:$0xff]  ;;  %v169_v14 = vld [vmem:[#allocation8 + $0x30] sm:$0xff] }
  0x1c   :  { %134 = vmatpush.msra.mxu0 %v104_v3  ;;  %v170_v13 = vld [vmem:[#allocation8 + $0x38] sm:$0xff]  ;;  %v168_v15 = vld [vmem:[#allocation8 + $0x28] sm:$0xff]  ;;  %v167_v16 = vld [vmem:[#allocation8 + $0x20] sm:$0xff] }
  0x1d   :  { %185 = vmatpush.msra.mxu2 %v176_v5  ;;  %v166_v17 = vld [vmem:[#allocation8 + $0x18] sm:$0xff]  ;;  %v165_v18 = vld [vmem:[#allocation8 + $0x10] sm:$0xff]  ;;  %v164_v19 = vld [vmem:[#allocation8 + $0x8] sm:$0xff] }
  0x1e   :  { %135 = vmatpush.msra.mxu0 %v102_v6  ;;  %v163_v20 = vld [vmem:[#allocation8] sm:$0xff]  ;;  %v221_v21 = vld [vmem:[#allocation10 + $0x78] sm:$0xff]  ;;  %v220_v22 = vld [vmem:[#allocation10 + $0x70] sm:$0xff] }
  0x1f   :  { %271 = vmatmul.msk.f32.vlgmr.msra.gmra.mxu0 %vm116_vm0, %v502_v7  ;;  %186 = vmatpush.msra.mxu2 %v175_v8  ;;  %v219_v23 = vld [vmem:[#allocation10 + $0x68] sm:$0xff]  ;;  %v218_v24 = vld [vmem:[#allocation10 + $0x60] sm:$0xff]  ;;  %v217_v25 = vld [vmem:[#allocation10 + $0x58] sm:$0xff] }
  0x20   :  { %222 = vmatpush.msra.mxu3 %v221_v21  ;;  %v216_v26 = vld [vmem:[#allocation10 + $0x50] sm:$0xff]  ;;  %v215_v27 = vld [vmem:[#allocation10 + $0x48] sm:$0xff]  ;;  %v214_v28 = vld [vmem:[#allocation10 + $0x40] sm:$0xff] }
  0x21   :  { %187 = vmatpush.msra.mxu2 %v174_v9  ;;  %v213_v29 = vld [vmem:[#allocation10 + $0x38] sm:$0xff]  ;;  %v212_v30 = vld [vmem:[#allocation10 + $0x30] sm:$0xff]  ;;  %v211_v31 = vld [vmem:[#allocation10 + $0x28] sm:$0xff] }
  0x22   :  { %223 = vmatpush.msra.mxu3 %v220_v22  ;;  %v110_v32 = vld [vmem:[#allocation7] sm:$0x3]  ;;  %v210_v33 = vld [vmem:[#allocation10 + $0x20] sm:$0xff]  ;;  %v208_v40 = vld [vmem:[#allocation10 + $0x10] sm:$0xff] }
  0x23   :  { %188 = vmatpush.msra.mxu2 %v173_v10  ;;  %v209_v34 = vld [vmem:[#allocation10 + $0x18] sm:$0xff]  ;;  %v112_v35 = vperm.slane %v110_v32, 0  ;;  %v207_v42 = vld [vmem:[#allocation10 + $0x8] sm:$0xff]  ;;  %v206_v44 = vld [vmem:[#allocation10] sm:$0xff]  ;;  %v113_v52 = vperm.slane %v110_v32, 1 }
  0x24   :  { %224 = vmatpush.msra.mxu3 %v219_v23  ;;  %v109_v41 = vld [vmem:[#allocation5 + $0x38] sm:$0xff]  ;;  %v107_v43 = vld [vmem:[#allocation5 + $0x28] sm:$0xff] }
  0x25   :  { %189 = vmatpush.msra.mxu2 %v172_v11  ;;  %152 = vmatpush.msra.mxu1 %v109_v41  ;;  %v105_v45 = vld [vmem:[#allocation5 + $0x18] sm:$0xff]  ;;  %v103_v46 = vld [vmem:[#allocation5 + $0x8] sm:$0xff] }
  0x26   :  { %225 = vmatpush.msra.mxu3 %v218_v24  ;;  %v283_v47 = vld [vmem:[%s521_s4] ss:$0 sm:$0xff] }
  0x27   :  { %190 = vmatpush.msra.mxu2 %v171_v12  ;;  %153 = vmatpush.msra.mxu1 %v107_v43  ;;  %v284_v55 = vld [vmem:[%s523_s6] ss:$0 sm:$0xff] }
  0x28   :  { %226 = vmatpush.msra.mxu3 %v217_v25 }
  0x29   :  { %191 = vmatpush.msra.mxu2 %v170_v13  ;;  %154 = vmatpush.msra.mxu1 %v105_v45 }
  0x2a   :  { %227 = vmatpush.msra.mxu3 %v216_v26 }
  0x2b   :  { %192 = vmatpush.msra.mxu2 %v169_v14  ;;  %155 = vmatpush.msra.mxu1 %v103_v46 }
  0x2c   :  { %228 = vmatpush.msra.mxu3 %v215_v27  ;;  %272 = vmatmul.msk.f32.vlgmr.msra.gmra.mxu1 %vm116_vm0, %v502_v7 }
  0x2d   :  { %193 = vmatpush.msra.mxu2 %v168_v15 }
  0x2e   :  { %229 = vmatpush.msra.mxu3 %v214_v28 }
  0x2f   :  { %194 = vmatpush.msra.mxu2 %v167_v16 }
  0x30   :  { %230 = vmatpush.msra.mxu3 %v213_v29 }
  0x31   :  { %195 = vmatpush.msra.mxu2 %v166_v17 }
  0x32   :  { %231 = vmatpush.msra.mxu3 %v212_v30 }
  0x33   :  { %196 = vmatpush.msra.mxu2 %v165_v18 }
  0x34   :  { %232 = vmatpush.msra.mxu3 %v211_v31 }
  0x35   :  { %197 = vmatpush.msra.mxu2 %v164_v19 }
  0x36   :  { %233 = vmatpush.msra.mxu3 %v210_v33 }
  0x37   :  { %198 = vmatpush.msra.mxu2 %v163_v20 }
  0x38   :  { %234 = vmatpush.msra.mxu3 %v209_v34 }
  0x3a   :  { %235 = vmatpush.msra.mxu3 %v208_v40 }
  0x3c   :  { %236 = vmatpush.msra.mxu3 %v207_v42 }
  0x3e   :  { %237 = vmatpush.msra.mxu3 %v206_v44 }
  0x9c   :  { %v137_v36 = vpop.f32.mrf.mxu0 }
  0x9d   :  { %v138_v37 = vadd.f32 %v137_v36, %v112_v35 }
  0x9f   :  { %vm160_vm1 = vcmp.ge.f32.partialorder %v138_v37, 0.0  ;;  %v161_v38 = vmul.f32 0.1, %v138_v37 }
  0xa1   :  { %v162_v39 = vsel %vm160_vm1, %v138_v37, %v161_v38 }
  0xa2   :  { %199 = vmatmul.f32.vlgmr.msra.gmra.mxu2 %v162_v39 }
  0xa9   :  { %v157_v53 = vpop.f32.mrf.mxu1 }
  0xaa   :  { %v158_v54 = vadd.f32 %v157_v53, %v113_v52 }
 0x125   :  { %v200_v48 = vpop.f32.mrf.mxu2 }
 0x126   :  { %v201_v49 = vadd.f32 %v283_v47, %v200_v48 }
 0x128   :  { %vm203_vm2 = vcmp.ge.f32.partialorder %v201_v49, 0.0  ;;  %v204_v50 = vmul.f32 0.1, %v201_v49 }
 0x12a   :  { %v205_v51 = vsel %vm203_vm2, %v201_v49, %v204_v50 }
 0x12b   :  { %238 = vmatmul.f32.vlgmr.msra.gmra.mxu3 %v205_v51 }
 0x1ae   :  { %v239_v56 = vpop.f32.mrf.mxu3 }
 0x1af   :  { %v242_v57 = vadd.f32 %v239_v56, %v158_v54 }
 0x1b1   :  { %v247_v58 = vadd.f32 %v284_v55, %v242_v57 }
 0x1b3   :  { %v249_v59 = vmul.f32 0.1, %v247_v58  ;;  %vm248_vm3 = vcmp.ge.f32.partialorder %v247_v58, 0.0 }
 0x1b5   :  { %v250_v60 = vsel %vm248_vm3, %v247_v58, %v249_v59 }
 0x1b6   :  { %251 = vst [vmem:[#allocation11] sm:$0x3] %v250_v60 }
 0x1b7   :  { %262 = dma.vmem_to_hbm [thread:$0]  %s258_s30, 32, %s260_s9, [#allocation4]  }
 0x1b8   :  { %435 = dma.done.wait [#allocation4], 32  }
 0x1b9   :  { %436 = vsyncadd [#allocation4], 4294967264 }
 0x1ba   :  { %267 = vsyncpa [#allocation3], 1 }
 0x1bb   :  { %268 = vsyncpa [#allocation6], 1 }
 0x1bc   :  { %269 = vsyncpa [#allocation9], 1 }
 0x1bd   :  { %270 = vsyncpa [#allocation4], 1 }

</bundles_post_ra>
